<compile_context>
chip_gen: v5e
topology: v5e:2x2
jax: 0.10.0
libtpu: 0.0.40
codegen_flags: <defaults>
</compile_context>

<pallas_src>
import numpy as np
import jax
import jax.numpy as jnp
from jax.experimental import pallas as pl
from jax.experimental.pallas import tpu as pltpu  # noqa: F401  (kept for TPU-specific tuning hooks)

B = 32            # batch (fixed by `.view(32, -1)` in the module)
T = 7             # conv "length" = original input_channel (Linear(112,1) => 16*T == 112)
C_IN = 68         # conv "channels" = original seq_len = num_inputs
C_HID = 16        # num_channels = [16, 16]
K = 5             # kernel_size
FW = T * C_HID    # real working feature width = 112
FP = 128          # lane-padded feature width (full vreg lane dim)
KIN = T * C_IN    # block-1 contraction dim = 476
KIN_PAD = 512     # padded to 4 full 128-lane vregs


# ----------------------------- glue: parameter folding -----------------------------

def conv_to_toeplitz(w_kio, dilation, length):
    """Fold a causal dilated Conv1d into a (T*Cin, T*Cout) matrix.

    w_kio: (K, Cin, Cout).  out[t] = sum_j W[j] . x[t - pad + j*d], pad = (K-1)*d,
    which is exactly PyTorch pad-both-sides(pad) followed by Chomp1d(pad).
    """
    k, cin, cout = w_kio.shape
    pad = (k - 1) * dilation
    m = np.zeros((length * cin, length * cout), np.float32)
    for t in range(length):
        for j in range(k):
            src = t - pad + j * dilation
            if src >= 0:
                m[src * cin:(src + 1) * cin, t * cout:(t + 1) * cout] = w_kio[j]
    return m


# ----------------------------------- the kernel ------------------------------------

def tcn_kernel(x_ref, w1f_ref, w12_ref, w21_ref, w22_ref, bias_ref, o_ref):
    # TODO(synk): nn.Dropout is treated as identity (inference mode); weight_norm is folded
    # into the effective weights at init time (g == ||v|| at init => effective weight == v).
    x = x_ref[...]                                   # (32, 512) bf16 (cols 476.. are zero)
    b = bias_ref[...]                                # (192, 256) f32, pre-broadcast over batch
    b1f = b[0 * B:1 * B, :]                          # (32, 256): [b_conv1 | 0 | b_down | 0]
    b12 = b[1 * B:2 * B, 0:FP]                       # (32, 128)
    b21 = b[2 * B:3 * B, 0:FP]
    b22 = b[3 * B:4 * B, 0:FP]
    wg = b[4 * B:5 * B, 0:FP]                        # classifier row (32, 128), lanes 112.. = 0
    bg = b[5 * B:6 * B, 0:1]                         # classifier bias (32, 1)

    # --- TemporalBlock 1 (68->16, d=1): conv1 and 1x1 downsample fused into one MXU dot ---
    r1 = jnp.dot(x, w1f_ref[...], preferred_element_type=jnp.float32) + b1f   # (32, 256)
    h = jnp.maximum(r1[:, 0:FP], 0.0)                # conv1 + relu   (padded lanes stay 0)
    res = r1[:, FP:2 * FP]                           # downsample path (lane-aligned split)
    h = jnp.maximum(
        jnp.dot(h.astype(jnp.bfloat16), w12_ref[...],
                preferred_element_type=jnp.float32) + b12, 0.0)
    y1 = jnp.maximum(h + res, 0.0)

    # --- TemporalBlock 2 (16->16, d=2, identity residual) ---
    h = jnp.maximum(
        jnp.dot(y1.astype(jnp.bfloat16), w21_ref[...],
                preferred_element_type=jnp.float32) + b21, 0.0)
    h = jnp.maximum(
        jnp.dot(h.astype(jnp.bfloat16), w22_ref[...],
                preferred_element_type=jnp.float32) + b22, 0.0)
    y2 = jnp.maximum(h + y1, 0.0)                    # lanes 112..127 are exactly zero

    # --- classifier_g: Linear(112, 1) on VPU+XLU (avoid an N=1 MXU matmul) ---
    # Padded lanes of wg/y2 are zero, so the 128-lane reduce equals the 112-lane reduce.
    o_ref[...] = jnp.sum(y2 * wg, axis=-1, keepdims=True) + bg


def temporal_conv_net(x_bic, kernel_params):
    # x_bic: (Batch, input_channel, seq_len) == (B, T, C_IN).
    # After the module's permute(0,2,1), the conv sees (B, C_IN, T); our (B, T, C) layout
    # flattened row-major is exactly x_bic.reshape(B, T*C_IN); then zero-pad K-dim to 512.
    w1f, w12, w21, w22, bias = kernel_params
    x_flat = x_bic.reshape(B, KIN)
    x_pad = jnp.pad(x_flat, ((0, 0), (0, KIN_PAD - KIN))).astype(jnp.bfloat16)
    # Single kernel step, no grid: the whole batch (M=32) runs at once and every operand is
    # one whole-array VMEM block (DMA'd exactly once).  On a few-microsecond, fixed-overhead
    # bound kernel this beats the previous 2-step batch grid on v5e/v6e (1 TensorCore) and is
    # the conservative default on v7x (per-core step overhead likely exceeds the split's gain).
    return pl.pallas_call(
        tcn_kernel,
        out_shape=jax.ShapeDtypeStruct((B, 1), jnp.float32),
    )(x_pad, w1f, w12, w21, w22, bias)


# -------------------------------- parameter init -----------------------------------

def init_raw_params(key):
    ks = jax.random.split(key, 12)
    raw = {
        # PyTorch Conv1d weights: (Cout, Cin, K), init normal(0, 0.01)
        'w1_conv1': 0.01 * jax.random.normal(ks[0], (C_HID, C_IN, K), jnp.float32),
        'w1_conv2': 0.01 * jax.random.normal(ks[1], (C_HID, C_HID, K), jnp.float32),
        'w1_down':  0.01 * jax.random.normal(ks[2], (C_HID, C_IN, 1), jnp.float32),
        'w2_conv1': 0.01 * jax.random.normal(ks[3], (C_HID, C_HID, K), jnp.float32),
        'w2_conv2': 0.01 * jax.random.normal(ks[4], (C_HID, C_HID, K), jnp.float32),
        'b1_conv1': 0.1 * jax.random.normal(ks[5], (C_HID,), jnp.float32),
        'b1_conv2': 0.1 * jax.random.normal(ks[6], (C_HID,), jnp.float32),
        'b1_down':  0.1 * jax.random.normal(ks[7], (C_HID,), jnp.float32),
        'b2_conv1': 0.1 * jax.random.normal(ks[8], (C_HID,), jnp.float32),
        'b2_conv2': 0.1 * jax.random.normal(ks[9], (C_HID,), jnp.float32),
        # classifier_g: nn.Linear(112, 1); weight indexed over torch flatten order c*T + t
        'wg': 0.1 * jax.random.normal(ks[10], (1, C_HID * T), jnp.float32),
        'bg': 0.1 * jax.random.normal(ks[11], (1,), jnp.float32),
    }
    return raw


def pack_kernel_params(raw):
    def kio(w):  # (Cout, Cin, K) -> (K, Cin, Cout)
        return np.asarray(w).transpose(2, 1, 0)

    w11 = conv_to_toeplitz(kio(raw['w1_conv1']), dilation=1, length=T)   # (476, 112)
    wd = conv_to_toeplitz(kio(raw['w1_down']), dilation=1, length=T)     # (476, 112)
    w12 = conv_to_toeplitz(kio(raw['w1_conv2']), dilation=1, length=T)   # (112, 112)
    w21 = conv_to_toeplitz(kio(raw['w2_conv1']), dilation=2, length=T)   # (112, 112)
    w22 = conv_to_toeplitz(kio(raw['w2_conv2']), dilation=2, length=T)   # (112, 112)

    # Fused + padded block-1 weight: K 476->512, N bands [conv1|pad->128|downsample|pad->256].
    w1f = np.zeros((KIN_PAD, 2 * FP), np.float32)
    w1f[:KIN, :FW] = w11
    w1f[:KIN, FP:FP + FW] = wd

    # (112,112) Toeplitz weights padded to full (128,128) so every dot is MXU/vreg aligned.
    def pad128(m):
        out = np.zeros((FP, FP), np.float32)
        out[:FW, :FW] = m
        return out

    w12p, w21p, w22p = pad128(w12), pad128(w21), pad128(w22)

    # One (192, 256) f32 buffer; every bias/classifier row pre-broadcast over the 32 batch
    # rows (kills in-kernel broadcast_in_dim and sub-vreg bias slices).  Padded lanes are 0.
    bias = np.zeros((6 * B, 2 * FP), np.float32)
    bias[0 * B:1 * B, :FW] = np.tile(np.asarray(raw['b1_conv1']), T)[None, :]
    bias[0 * B:1 * B, FP:FP + FW] = np.tile(np.asarray(raw['b1_down']), T)[None, :]
    bias[1 * B:2 * B, :FW] = np.tile(np.asarray(raw['b1_conv2']), T)[None, :]
    bias[2 * B:3 * B, :FW] = np.tile(np.asarray(raw['b2_conv1']), T)[None, :]
    bias[3 * B:4 * B, :FW] = np.tile(np.asarray(raw['b2_conv2']), T)[None, :]
    # classifier weight: torch flatten order c*T + t  ->  kernel order t*C_HID + c
    bias[4 * B:5 * B, :FW] = np.asarray(raw['wg'])[0].reshape(C_HID, T).T.reshape(-1)[None, :]
    bias[5 * B:6 * B, 0] = float(np.asarray(raw['bg'])[0])

    tobf16 = lambda a: jnp.asarray(a, dtype=jnp.bfloat16)
    return (tobf16(w1f), tobf16(w12p), tobf16(w21p), tobf16(w22p),
            jnp.asarray(bias, dtype=jnp.float32))


# -------------------------- plain-JAX reference (for checking) ---------------------

def ref_forward(x_bic, raw):
    xc = jnp.transpose(x_bic, (0, 2, 1))  # (B, 68, 7): conv NCL input (the module's permute)

    def causal_conv(x, w, b, d):
        k = w.shape[-1]
        pad = (k - 1) * d
        xp = jnp.pad(x, ((0, 0), (0, 0), (pad, 0)))
        y = jax.lax.conv_general_dilated(
            xp, w, window_strides=(1,), padding='VALID',
            rhs_dilation=(d,), dimension_numbers=('NCH', 'OIH', 'NCH'))
        return y + b[None, :, None]

    def block(x, w1, b1, w2, b2, wd, bd, d):
        h = jax.nn.relu(causal_conv(x, w1, b1, d))
        h = jax.nn.relu(causal_conv(h, w2, b2, d))
        res = x if wd is None else causal_conv(x, wd, bd, 1)
        return jax.nn.relu(h + res)

    y = block(xc, raw['w1_conv1'], raw['b1_conv1'], raw['w1_conv2'], raw['b1_conv2'],
              raw['w1_down'], raw['b1_down'], 1)
    y = block(y, raw['w2_conv1'], raw['b2_conv1'], raw['w2_conv2'], raw['b2_conv2'],
              None, None, 2)
    flat = y.reshape(B, -1)                     # (32, 112) in torch (c, t) flatten order
    return flat @ raw['wg'].T + raw['bg']       # (32, 1)


# ------------------------------------- main -----------------------------------------

if __name__ == "__main__":
    key = jax.random.PRNGKey(0)
    kx, kp = jax.random.split(key)
    # module input: (Batch, input_channel, seq_len) = (32, 7, 68) — fixed by the module.
    x = jax.random.normal(kx, (B, T, C_IN), jnp.float32)

    raw = init_raw_params(kp)
    kernel_params = pack_kernel_params(raw)

    out = jax.block_until_ready(temporal_conv_net(x, kernel_params))
    ref = jax.block_until_ready(ref_forward(x, raw))

    assert out.shape == (B, 1), out.shape
    # bf16 weights/activations feeding f32-accumulating dots -> loosened tolerance.
    np.testing.assert_allclose(np.asarray(out), np.asarray(ref), rtol=2e-2, atol=2e-2)
    print("KERNEL_OK")
</pallas_src>

<mosaic_0001>
module attributes {stable_mosaic.version = 11 : i64} {
  func.func @tcn_kernel(%arg0: memref<32x512xbf16, #tpu.memory_space<vmem>>, %arg1: memref<512x256xbf16, #tpu.memory_space<vmem>>, %arg2: memref<128x128xbf16, #tpu.memory_space<vmem>>, %arg3: memref<128x128xbf16, #tpu.memory_space<vmem>>, %arg4: memref<128x128xbf16, #tpu.memory_space<vmem>>, %arg5: memref<192x256xf32, #tpu.memory_space<vmem>>, %arg6: memref<32x1xf32, #tpu.memory_space<vmem>>) attributes {dimension_semantics = [], scalar_prefetch = 0 : i64, scratch_operands = 0 : i64, tpu.core_type = #tpu.core_type<tc>} {
    %c0 = arith.constant 0 : index
    %c0_0 = arith.constant 0 : index
    %0 = vector.load %arg0[%c0, %c0_0] : memref<32x512xbf16, #tpu.memory_space<vmem>>, vector<32x512xbf16>
    %c0_1 = arith.constant 0 : index
    %c0_2 = arith.constant 0 : index
    %1 = vector.load %arg5[%c0_1, %c0_2] : memref<192x256xf32, #tpu.memory_space<vmem>>, vector<192x256xf32>
    %2 = vector.extract_strided_slice %1 {offsets = [0, 0], sizes = [32, 256], strides = [1, 1]} : vector<192x256xf32> to vector<32x256xf32>
    %3 = vector.extract_strided_slice %1 {offsets = [32, 0], sizes = [32, 128], strides = [1, 1]} : vector<192x256xf32> to vector<32x128xf32>
    %4 = vector.extract_strided_slice %1 {offsets = [64, 0], sizes = [32, 128], strides = [1, 1]} : vector<192x256xf32> to vector<32x128xf32>
    %5 = vector.extract_strided_slice %1 {offsets = [96, 0], sizes = [32, 128], strides = [1, 1]} : vector<192x256xf32> to vector<32x128xf32>
    %6 = vector.extract_strided_slice %1 {offsets = [128, 0], sizes = [32, 128], strides = [1, 1]} : vector<192x256xf32> to vector<32x128xf32>
    %7 = vector.extract_strided_slice %1 {offsets = [160, 0], sizes = [32, 1], strides = [1, 1]} : vector<192x256xf32> to vector<32x1xf32>
    %c0_3 = arith.constant 0 : index
    %c0_4 = arith.constant 0 : index
    %8 = vector.load %arg1[%c0_3, %c0_4] : memref<512x256xbf16, #tpu.memory_space<vmem>>, vector<512x256xbf16>
    %cst = arith.constant dense<0.000000e+00> : vector<32x256xf32>
    %9 = tpu.matmul %0, %8, %cst {dimension_numbers = #tpu.dot_dimension_numbers<[1], [0], [0], [1], [0, 0, 1, 1], [], []>} : vector<32x512xbf16>, vector<512x256xbf16>, vector<32x256xf32> -> vector<32x256xf32>
    %10 = arith.addf %9, %2 : vector<32x256xf32>
    %11 = vector.extract_strided_slice %10 {offsets = [0, 0], sizes = [32, 128], strides = [1, 1]} : vector<32x256xf32> to vector<32x128xf32>
    %cst_5 = arith.constant 0.000000e+00 : f32
    %12 = vector.broadcast %cst_5 : f32 to vector<32x128xf32>
    %13 = arith.maximumf %11, %12 : vector<32x128xf32>
    %14 = vector.extract_strided_slice %10 {offsets = [0, 128], sizes = [32, 128], strides = [1, 1]} : vector<32x256xf32> to vector<32x128xf32>
    %15 = arith.truncf %13 : vector<32x128xf32> to vector<32x128xbf16>
    %c0_6 = arith.constant 0 : index
    %c0_7 = arith.constant 0 : index
    %16 = vector.load %arg2[%c0_6, %c0_7] : memref<128x128xbf16, #tpu.memory_space<vmem>>, vector<128x128xbf16>
    %cst_8 = arith.constant dense<0.000000e+00> : vector<32x128xf32>
    %17 = tpu.matmul %15, %16, %cst_8 {dimension_numbers = #tpu.dot_dimension_numbers<[1], [0], [0], [1], [0, 0, 1, 1], [], []>} : vector<32x128xbf16>, vector<128x128xbf16>, vector<32x128xf32> -> vector<32x128xf32>
    %18 = arith.addf %17, %3 : vector<32x128xf32>
    %cst_9 = arith.constant 0.000000e+00 : f32
    %19 = vector.broadcast %cst_9 : f32 to vector<32x128xf32>
    %20 = arith.maximumf %18, %19 : vector<32x128xf32>
    %21 = arith.addf %20, %14 : vector<32x128xf32>
    %cst_10 = arith.constant 0.000000e+00 : f32
    %22 = vector.broadcast %cst_10 : f32 to vector<32x128xf32>
    %23 = arith.maximumf %21, %22 : vector<32x128xf32>
    %24 = arith.truncf %23 : vector<32x128xf32> to vector<32x128xbf16>
    %c0_11 = arith.constant 0 : index
    %c0_12 = arith.constant 0 : index
    %25 = vector.load %arg3[%c0_11, %c0_12] : memref<128x128xbf16, #tpu.memory_space<vmem>>, vector<128x128xbf16>
    %cst_13 = arith.constant dense<0.000000e+00> : vector<32x128xf32>
    %26 = tpu.matmul %24, %25, %cst_13 {dimension_numbers = #tpu.dot_dimension_numbers<[1], [0], [0], [1], [0, 0, 1, 1], [], []>} : vector<32x128xbf16>, vector<128x128xbf16>, vector<32x128xf32> -> vector<32x128xf32>
    %27 = arith.addf %26, %4 : vector<32x128xf32>
    %cst_14 = arith.constant 0.000000e+00 : f32
    %28 = vector.broadcast %cst_14 : f32 to vector<32x128xf32>
    %29 = arith.maximumf %27, %28 : vector<32x128xf32>
    %30 = arith.truncf %29 : vector<32x128xf32> to vector<32x128xbf16>
    %c0_15 = arith.constant 0 : index
    %c0_16 = arith.constant 0 : index
    %31 = vector.load %arg4[%c0_15, %c0_16] : memref<128x128xbf16, #tpu.memory_space<vmem>>, vector<128x128xbf16>
    %cst_17 = arith.constant dense<0.000000e+00> : vector<32x128xf32>
    %32 = tpu.matmul %30, %31, %cst_17 {dimension_numbers = #tpu.dot_dimension_numbers<[1], [0], [0], [1], [0, 0, 1, 1], [], []>} : vector<32x128xbf16>, vector<128x128xbf16>, vector<32x128xf32> -> vector<32x128xf32>
    %33 = arith.addf %32, %5 : vector<32x128xf32>
    %cst_18 = arith.constant 0.000000e+00 : f32
    %34 = vector.broadcast %cst_18 : f32 to vector<32x128xf32>
    %35 = arith.maximumf %33, %34 : vector<32x128xf32>
    %36 = arith.addf %35, %23 : vector<32x128xf32>
    %cst_19 = arith.constant 0.000000e+00 : f32
    %37 = vector.broadcast %cst_19 : f32 to vector<32x128xf32>
    %38 = arith.maximumf %36, %37 : vector<32x128xf32>
    %39 = arith.mulf %38, %6 : vector<32x128xf32>
    %cst_20 = arith.constant dense<0.000000e+00> : vector<32xf32>
    %40 = vector.multi_reduction <add>, %39, %cst_20 [1] : vector<32x128xf32> to vector<32xf32>
    %41 = vector.shape_cast %40 : vector<32xf32> to vector<32x1xf32>
    %42 = arith.addf %41, %7 : vector<32x1xf32>
    %c0_21 = arith.constant 0 : index
    %c0_22 = arith.constant 0 : index
    %43 = vector.load %arg6[%c0_21, %c0_22] : memref<32x1xf32, #tpu.memory_space<vmem>>, vector<32x1xf32>
    tpu.vector_store %arg6[%c0_21, %c0_22], %42 {strides = array<i32>} : memref<32x1xf32, #tpu.memory_space<vmem>>, vector<32x1xf32>,
    return
  }
}

</mosaic_0001>

<bundles_post_ra>
// kernel: tpu_custom_call.1
= control target key start
LH: loop header
LB: loop body
LE: loop exit
PB: predicated region body
PF: predicated region fallthrough
CT: control target
= control target key end

     0   :  { %11 = vsyncpa [#allocation3], 0  ;;  %s1823_s0 = inlined_call_operand.hbm [shape: bf16[32,512], index: 0, kind: input, shape index: {}]   ;;  %s1824_s1 = inlined_call_operand.hbm [shape: bf16[512,256], index: 1, kind: input, shape index: {}]   ;;  %s1825_s2 = inlined_call_operand.hbm [shape: bf16[128,128], index: 2, kind: input, shape index: {}]   ;;  %s1826_s3 = inlined_call_operand.hbm [shape: bf16[128,128], index: 3, kind: input, shape index: {}]   ;;  %s1827_s4 = inlined_call_operand.hbm [shape: bf16[128,128], index: 4, kind: input, shape index: {}]   ;;  %s1828_s5 = inlined_call_operand.hbm [shape: f32[192,256], index: 5, kind: input, shape index: {}]   ;;  %s1829_s6 = inlined_call_operand.vmem [shape: f32[32,1], index: 6, kind: output, shape index: {}]  }
   0x1   :  { %12 = vsyncpa [#allocation5], 0 }
   0x2   :  { %13 = vsyncpa [#allocation8], 0  ;;  %s32_s23 = sshll.u32 %s1824_s1, 4  ;;  %s33_s23 = int_to_ptr.hbm [resolvable:$true] %s32_s23 }
   0x3   :  { %14 = vsyncpa [#allocation11], 0  ;;  %s1697_s24 = smov [#allocation4]   ;;  %s1698_s26 = smov 128  }
   0x4   :  { %s34_s25 = sshll.u32 %s1697_s24, 4  ;;  %s1699_s27 = smov 8   ;;  %s35_s25 = int_to_ptr.vmem [resolvable:$true] %s34_s25 }
   0x5   :  { %40 = dma.hbm_to_vmem [thread:$0]  %s33_s23, 8192, %s35_s25, [#allocation5], %s1698_s26, %s1698_s26, %s1699_s27  }
   0x6   :  { %s58_s30 = sshll.u32 %s1826_s3, 4  ;;  %s1700_s7 = smov [#allocation7]   ;;  %s59_s30 = int_to_ptr.hbm [resolvable:$true] %s58_s30 }
   0x7   :  { %s60_s8 = sshll.u32 %s1700_s7, 4  ;;  %s19_s11 = sshll.u32 %s1823_s0, 4  ;;  %s61_s8 = int_to_ptr.vmem [resolvable:$true] %s60_s8  ;;  %s20_s11 = int_to_ptr.hbm [resolvable:$true] %s19_s11 }
   0x8   :  { %s1701_s1 = smov 64   ;;  %s1702_s12 = smov 4  }
   0x9   :  { %66 = dma.hbm_to_vmem [thread:$0]  %s59_s30, 1024, %s61_s8, [#allocation8], %s1701_s1, %s1701_s1, %s1702_s12  }
   0xa   :  { %s1703_s13 = smov [#allocation2]   ;;  %s45_s17 = sshll.u32 %s1825_s2, 4  ;;  %s46_s17 = int_to_ptr.hbm [resolvable:$true] %s45_s17 }
   0xb   :  { %s21_s14 = sshll.u32 %s1703_s13, 4  ;;  %s1704_s3 = smov 256   ;;  %s22_s14 = int_to_ptr.vmem [resolvable:$true] %s21_s14 }
   0xc   :  { %s1705_s18 = smov 16   ;;  %s1706_s19 = smov [#allocation6]  }
   0xd   :  { %27 = dma.hbm_to_vmem [thread:$0]  %s20_s11, 1024, %s22_s14, [#allocation3], %s1704_s3, %s1704_s3, %s1705_s18  }
   0xe   :  { %s47_s20 = sshll.u32 %s1706_s19, 4  ;;  %s71_s22 = sshll.u32 %s1827_s4, 4  ;;  %s48_s20 = int_to_ptr.vmem [resolvable:$true] %s47_s20  ;;  %s72_s22 = int_to_ptr.hbm [resolvable:$true] %s71_s22 }
   0xf   :  { %53 = dma.hbm_to_vmem [thread:$0]  %s46_s17, 1024, %s48_s20, [#allocation5], %s1701_s1, %s1701_s1, %s1702_s12  }
  0x10   :  { %s84_s25 = sshll.u32 %s1828_s5, 4  ;;  %s1707_s26 = smov [#allocation9]   ;;  %s85_s25 = int_to_ptr.hbm [resolvable:$true] %s84_s25 }
  0x11   :  { %s73_s27 = sshll.u32 %s1707_s26, 4  ;;  %s1708_s2 = smov [#allocation10]   ;;  %s74_s27 = int_to_ptr.vmem [resolvable:$true] %s73_s27 }
  0x12   :  { %79 = dma.hbm_to_vmem [thread:$0]  %s72_s22, 1024, %s74_s27, [#allocation8], %s1701_s1, %s1701_s1, %s1702_s12  }
  0x13   :  { %s86_s28 = sshll.u32 %s1708_s2, 4  ;;  %s87_s28 = int_to_ptr.vmem [resolvable:$true] %s86_s28 }
  0x14   :  { %92 = dma.hbm_to_vmem [thread:$0]  %s85_s25, 6144, %s87_s28, [#allocation11], %s1704_s3, %s1704_s3, %s1705_s18  }
  0x15   :  { %1689 = dma.done.wait [#allocation3], 1024  }
  0x16   :  { %1690 = vsyncadd [#allocation3], 4294966272 }
  0x17   :  { %1691 = dma.done.wait [#allocation5], 9216  }
  0x18   :  { %1692 = vsyncadd [#allocation5], 4294958080 }
  0x19   :  { %1693 = dma.done.wait [#allocation8], 2048  }
  0x1a   :  { %1694 = vsyncadd [#allocation8], 4294965248 }
  0x1b   :  { %1695 = dma.done.wait [#allocation11], 6144  }
  0x1c   :  { %1696 = vsyncadd [#allocation11], 4294961152  ;;  %v1135_v0 = vld [vmem:[#allocation4 + $0x70] sm:$0xf]  ;;  %v1452_v1 = vld [vmem:[#allocation4 + $0x74] sm:$0xf0] }
  0x1d   :  { %v1199_v2 = vld [vmem:[#allocation4 + $0xf0] sm:$0xf]  ;;  %v1136_v3 = vor.u32 %v1452_v1, %v1135_v0  ;;  %v1468_v4 = vld [vmem:[#allocation4 + $0xf4] sm:$0xf0]  ;;  %v1127_v11 = vld [vmem:[#allocation4 + $0x60] sm:$0xf] }
  0x1e   :  { %v1263_v5 = vld [vmem:[#allocation4 + $0x170] sm:$0xf]  ;;  %v1484_v6 = vld [vmem:[#allocation4 + $0x174] sm:$0xf0]  ;;  %v1200_v7 = vor.u32 %v1468_v4, %v1199_v2  ;;  %v1450_v13 = vld [vmem:[#allocation4 + $0x64] sm:$0xf0] }
  0x1f   :  { %v1264_v8 = vor.u32 %v1484_v6, %v1263_v5  ;;  %v1327_v9 = vld [vmem:[#allocation4 + $0x1f0] sm:$0xf]  ;;  %v1500_v10 = vld [vmem:[#allocation4 + $0x1f4] sm:$0xf0]  ;;  %577 = vmatpush.bf16.msra.mxu0 %v1136_v3  ;;  %v1191_v14 = vld [vmem:[#allocation4 + $0xe0] sm:$0xf]  ;;  %v1128_v16 = vor.u32 %v1450_v13, %v1127_v11 }
  0x20   :  { %v1328_v12 = vor.u32 %v1500_v10, %v1327_v9  ;;  %v1466_v15 = vld [vmem:[#allocation4 + $0xe4] sm:$0xf0]  ;;  %596 = vmatpush.bf16.msra.mxu1 %v1200_v7  ;;  %v1255_v18 = vld [vmem:[#allocation4 + $0x160] sm:$0xf]  ;;  %v1119_v23 = vld [vmem:[#allocation4 + $0x50] sm:$0xf] }
  0x21   :  { %615 = vmatpush.bf16.msra.mxu2 %v1264_v8  ;;  %v1192_v17 = vor.u32 %v1466_v15, %v1191_v14  ;;  %v1482_v19 = vld [vmem:[#allocation4 + $0x164] sm:$0xf0]  ;;  %v1319_v20 = vld [vmem:[#allocation4 + $0x1e0] sm:$0xf]  ;;  %v1448_v24 = vld [vmem:[#allocation4 + $0x54] sm:$0xf0] }
  0x22   :  { %634 = vmatpush.bf16.msra.mxu3 %v1328_v12  ;;  %v1256_v21 = vor.u32 %v1482_v19, %v1255_v18  ;;  %v1498_v22 = vld [vmem:[#allocation4 + $0x1e4] sm:$0xf0]  ;;  %v1183_v26 = vld [vmem:[#allocation4 + $0xd0] sm:$0xf]  ;;  %v1464_v27 = vld [vmem:[#allocation4 + $0xd4] sm:$0xf0]  ;;  %v1120_v29 = vor.u32 %v1448_v24, %v1119_v23 }
  0x23   :  { %v1320_v25 = vor.u32 %v1498_v22, %v1319_v20  ;;  %v1247_v28 = vld [vmem:[#allocation4 + $0x150] sm:$0xf]  ;;  %578 = vmatpush.bf16.msra.mxu0 %v1128_v16  ;;  %v1480_v30 = vld [vmem:[#allocation4 + $0x154] sm:$0xf0]  ;;  %v1184_v33 = vor.u32 %v1464_v27, %v1183_v26  ;;  %v1111_v35 = vld [vmem:[#allocation4 + $0x40] sm:$0xf] }
  0x24   :  { %v1311_v31 = vld [vmem:[#allocation4 + $0x1d0] sm:$0xf]  ;;  %v1496_v32 = vld [vmem:[#allocation4 + $0x1d4] sm:$0xf0]  ;;  %597 = vmatpush.bf16.msra.mxu1 %v1192_v17  ;;  %v1248_v34 = vor.u32 %v1480_v30, %v1247_v28  ;;  %v1446_v36 = vld [vmem:[#allocation4 + $0x44] sm:$0xf0] }
  0x25   :  { %616 = vmatpush.bf16.msra.mxu2 %v1256_v21  ;;  %v1175_v37 = vld [vmem:[#allocation4 + $0xc0] sm:$0xf]  ;;  %v1312_v38 = vor.u32 %v1496_v32, %v1311_v31  ;;  %v1462_v39 = vld [vmem:[#allocation4 + $0xc4] sm:$0xf0]  ;;  %v1112_v44 = vor.u32 %v1446_v36, %v1111_v35  ;;  %v1103_v47 = vld [vmem:[#allocation4 + $0x30] sm:$0xf] }
  0x26   :  { %635 = vmatpush.bf16.msra.mxu3 %v1320_v25  ;;  %v1239_v40 = vld [vmem:[#allocation4 + $0x140] sm:$0xf]  ;;  %v1478_v41 = vld [vmem:[#allocation4 + $0x144] sm:$0xf0]  ;;  %v1176_v45 = vor.u32 %v1462_v39, %v1175_v37  ;;  %v1444_v48 = vld [vmem:[#allocation4 + $0x34] sm:$0xf0] }
  0x27   :  { %v1303_v42 = vld [vmem:[#allocation4 + $0x1c0] sm:$0xf]  ;;  %v1494_v43 = vld [vmem:[#allocation4 + $0x1c4] sm:$0xf0]  ;;  %579 = vmatpush.bf16.msra.mxu0 %v1120_v29  ;;  %v1240_v46 = vor.u32 %v1478_v41, %v1239_v40  ;;  %v1167_v49 = vld [vmem:[#allocation4 + $0xb0] sm:$0xf]  ;;  %v1104_v56 = vor.u32 %v1444_v48, %v1103_v47 }
  0x28   :  { %598 = vmatpush.bf16.msra.mxu1 %v1184_v33  ;;  %v1304_v50 = vor.u32 %v1494_v43, %v1303_v42  ;;  %v1460_v51 = vld [vmem:[#allocation4 + $0xb4] sm:$0xf0]  ;;  %v1231_v52 = vld [vmem:[#allocation4 + $0x130] sm:$0xf]  ;;  %v1095_v59 = vld [vmem:[#allocation4 + $0x20] sm:$0xf] }
  0x29   :  { %617 = vmatpush.bf16.msra.mxu2 %v1248_v34  ;;  %v1476_v53 = vld [vmem:[#allocation4 + $0x134] sm:$0xf0]  ;;  %v1295_v54 = vld [vmem:[#allocation4 + $0x1b0] sm:$0xf]  ;;  %v1168_v57 = vor.u32 %v1460_v51, %v1167_v49  ;;  %v1442_v60 = vld [vmem:[#allocation4 + $0x24] sm:$0xf0] }
  0x2a   :  { %636 = vmatpush.bf16.msra.mxu3 %v1312_v38  ;;  %v1492_v55 = vld [vmem:[#allocation4 + $0x1b4] sm:$0xf0]  ;;  %v1232_v58 = vor.u32 %v1476_v53, %v1231_v52  ;;  %v1159_v61 = vld [vmem:[#allocation4 + $0xa0] sm:$0xf]  ;;  %v1458_v63 = vld [vmem:[#allocation4 + $0xa4] sm:$0xf0]  ;;  %v1096_v4 = vor.u32 %v1442_v60, %v1095_v59 }
  0x2b   :  { %580 = vmatpush.bf16.msra.mxu0 %v1112_v44  ;;  %v1296_v62 = vor.u32 %v1492_v55, %v1295_v54  ;;  %v1223_v0 = vld [vmem:[#allocation4 + $0x120] sm:$0xf]  ;;  %v1474_v1 = vld [vmem:[#allocation4 + $0x124] sm:$0xf0]  ;;  %v1160_v5 = vor.u32 %v1458_v63, %v1159_v61  ;;  %v1087_v7 = vld [vmem:[#allocation4 + $0x10] sm:$0xf] }
  0x2c   :  { %599 = vmatpush.bf16.msra.mxu1 %v1176_v45  ;;  %v1287_v2 = vld [vmem:[#allocation4 + $0x1a0] sm:$0xf]  ;;  %v1490_v3 = vld [vmem:[#allocation4 + $0x1a4] sm:$0xf0]  ;;  %v1224_v6 = vor.u32 %v1474_v1, %v1223_v0  ;;  %v1440_v8 = vld [vmem:[#allocation4 + $0x14] sm:$0xf0] }
  0x2d   :  { %618 = vmatpush.bf16.msra.mxu2 %v1240_v46  ;;  %v1151_v9 = vld [vmem:[#allocation4 + $0x90] sm:$0xf]  ;;  %v1288_v10 = vor.u32 %v1490_v3, %v1287_v2  ;;  %v1456_v11 = vld [vmem:[#allocation4 + $0x94] sm:$0xf0]  ;;  %v1079_v16 = vld [vmem:[#allocation4] sm:$0xf]  ;;  %v1088_v17 = vor.u32 %v1440_v8, %v1087_v7 }
  0x2e   :  { %637 = vmatpush.bf16.msra.mxu3 %v1304_v50  ;;  %v1215_v12 = vld [vmem:[#allocation4 + $0x110] sm:$0xf]  ;;  %v1472_v13 = vld [vmem:[#allocation4 + $0x114] sm:$0xf0]  ;;  %v1438_v18 = vld [vmem:[#allocation4 + $0x4] sm:$0xf0]  ;;  %v1152_v21 = vor.u32 %v1456_v11, %v1151_v9 }
  0x2f   :  { %581 = vmatpush.bf16.msra.mxu0 %v1104_v56  ;;  %v1279_v14 = vld [vmem:[#allocation4 + $0x190] sm:$0xf]  ;;  %v1488_v15 = vld [vmem:[#allocation4 + $0x194] sm:$0xf0]  ;;  %v1143_v19 = vld [vmem:[#allocation4 + $0x80] sm:$0xf]  ;;  %v1216_v22 = vor.u32 %v1472_v13, %v1215_v12  ;;  %v1080_v34 = vor.u32 %v1438_v18, %v1079_v16 }
  0x30   :  { %600 = vmatpush.bf16.msra.mxu1 %v1168_v57  ;;  %v1454_v20 = vld [vmem:[#allocation4 + $0x84] sm:$0xf0]  ;;  %v1207_v23 = vld [vmem:[#allocation4 + $0x100] sm:$0xf]  ;;  %v1280_v26 = vor.u32 %v1488_v15, %v1279_v14  ;;  %v1431_v29 = vld [vmem:[#allocation2 + $0xc] sm:$0xf0] }
  0x31   :  { %619 = vmatpush.bf16.msra.mxu2 %v1232_v58  ;;  %v1470_v24 = vld [vmem:[#allocation4 + $0x104] sm:$0xf0]  ;;  %v1271_v25 = vld [vmem:[#allocation4 + $0x180] sm:$0xf]  ;;  %v1429_v30 = vld [vmem:[#allocation2 + $0x4] sm:$0xf]  ;;  %v1144_v38 = vor.u32 %v1454_v20, %v1143_v19 }
  0x32   :  { %638 = vmatpush.bf16.msra.mxu3 %v1296_v62  ;;  %v1486_v27 = vld [vmem:[#allocation4 + $0x184] sm:$0xf0]  ;;  %v1047_v28 = vld [vmem:[#allocation2] sm:$0xf]  ;;  %v1049_v31 = vld [vmem:[#allocation2 + $0x10] sm:$0xf0]  ;;  %v1208_v39 = vor.u32 %v1470_v24, %v1207_v23 }
  0x33   :  { %582 = vmatpush.bf16.msra.mxu0 %v1096_v4  ;;  %v1055_v32 = vld [vmem:[#allocation2 + $0x8] sm:$0xf]  ;;  %v1483_v33 = vld [vmem:[#allocation4 + $0x174] sm:$0xf]  ;;  %v1432_v35 = vld [vmem:[#allocation2 + $0x14] sm:$0xf0]  ;;  %v1272_v43 = vor.u32 %v1486_v27, %v1271_v25  ;;  %v1762_v48 = vor.u32 %v1431_v29, %v1047_v28  ;;  %v1764_v53 = vor.u32 %v1429_v30, %v1049_v31 }
  0x34   :  { %601 = vmatpush.bf16.msra.mxu1 %v1160_v5  ;;  %v1430_v36 = vld [vmem:[#allocation2 + $0xc] sm:$0xf]  ;;  %v1265_v37 = vld [vmem:[#allocation4 + $0x178] sm:$0xf0]  ;;  %v1499_v41 = vld [vmem:[#allocation4 + $0x1f4] sm:$0xf]  ;;  %v1766_v54 = vor.u32 %v1432_v35, %v1055_v32 }
  0x35   :  { %620 = vmatpush.bf16.msra.mxu2 %v1224_v6  ;;  %v1057_v40 = vld [vmem:[#allocation2 + $0x18] sm:$0xf0]  ;;  %v1268_v44 = vor.u32 %v1483_v33, %v1265_v37  ;;  %v1451_v45 = vld [vmem:[#allocation4 + $0x74] sm:$0xf]  ;;  %v1481_v51 = vld [vmem:[#allocation4 + $0x164] sm:$0xf] }
  0x36   :  { %639 = vmatpush.bf16.msra.mxu3 %v1288_v10  ;;  %v1329_v42 = vld [vmem:[#allocation4 + $0x1f8] sm:$0xf0]  ;;  %v1467_v47 = vld [vmem:[#allocation4 + $0xf4] sm:$0xf]  ;;  %v1257_v52 = vld [vmem:[#allocation4 + $0x168] sm:$0xf0]  ;;  %v1768_v57 = vor.u32 %v1430_v36, %v1057_v40 }
  0x37   :  { %583 = vmatpush.bf16.msra.mxu0 %v1088_v17  ;;  %v1137_v46 = vld [vmem:[#allocation4 + $0x78] sm:$0xf0]  ;;  %v1332_v49 = vor.u32 %v1499_v41, %v1329_v42  ;;  %v1497_v55 = vld [vmem:[#allocation4 + $0x1e4] sm:$0xf]  ;;  %v1321_v56 = vld [vmem:[#allocation4 + $0x1e8] sm:$0xf0]  ;;  %v1260_v60 = vor.u32 %v1481_v51, %v1257_v52 }
  0x38   :  { %602 = vmatpush.bf16.msra.mxu1 %v1152_v21  ;;  %v1201_v50 = vld [vmem:[#allocation4 + $0xf8] sm:$0xf0]  ;;  %v1140_v58 = vor.u32 %v1451_v45, %v1137_v46  ;;  %v1449_v61 = vld [vmem:[#allocation4 + $0x64] sm:$0xf]  ;;  %v1129_v62 = vld [vmem:[#allocation4 + $0x68] sm:$0xf0]  ;;  %v1324_v0 = vor.u32 %v1497_v55, %v1321_v56 }
  0x39   :  { %621 = vmatpush.bf16.msra.mxu2 %v1216_v22  ;;  %v1204_v59 = vor.u32 %v1467_v47, %v1201_v50  ;;  %v1465_v63 = vld [vmem:[#allocation4 + $0xe4] sm:$0xf]  ;;  %v1193_v1 = vld [vmem:[#allocation4 + $0xe8] sm:$0xf0]  ;;  %v1479_v2 = vld [vmem:[#allocation4 + $0x154] sm:$0xf]  ;;  %v1132_v6 = vor.u32 %v1449_v61, %v1129_v62 }
  0x3a   :  { %640 = vmatpush.bf16.msra.mxu3 %v1280_v26  ;;  %v1249_v3 = vld [vmem:[#allocation4 + $0x158] sm:$0xf0]  ;;  %v1495_v4 = vld [vmem:[#allocation4 + $0x1d4] sm:$0xf]  ;;  %v1196_v7 = vor.u32 %v1465_v63, %v1193_v1  ;;  %v1477_v14 = vld [vmem:[#allocation4 + $0x144] sm:$0xf] }
  0x3b   :  { %584 = vmatpush.bf16.msra.mxu0 %v1080_v34  ;;  %v1313_v5 = vld [vmem:[#allocation4 + $0x1d8] sm:$0xf0]  ;;  %v1252_v8 = vor.u32 %v1479_v2, %v1249_v3  ;;  %v1447_v9 = vld [vmem:[#allocation4 + $0x54] sm:$0xf]  ;;  %v1241_v15 = vld [vmem:[#allocation4 + $0x148] sm:$0xf0] }
  0x3c   :  { %603 = vmatpush.bf16.msra.mxu1 %v1144_v38  ;;  %v1121_v10 = vld [vmem:[#allocation4 + $0x58] sm:$0xf0]  ;;  %v1463_v11 = vld [vmem:[#allocation4 + $0xd4] sm:$0xf]  ;;  %v1316_v12 = vor.u32 %v1495_v4, %v1313_v5  ;;  %v1493_v16 = vld [vmem:[#allocation4 + $0x1c4] sm:$0xf]  ;;  %v1244_v22 = vor.u32 %v1477_v14, %v1241_v15 }
  0x3d   :  { %622 = vmatpush.bf16.msra.mxu2 %v1208_v39  ;;  %v1185_v13 = vld [vmem:[#allocation4 + $0xd8] sm:$0xf0]  ;;  %v1305_v17 = vld [vmem:[#allocation4 + $0x1c8] sm:$0xf0]  ;;  %v1124_v18 = vor.u32 %v1447_v9, %v1121_v10  ;;  %v1063_v19 = vld [vmem:[#allocation2 + $0x20] sm:$0xf] }
  0x3e   :  { %641 = vmatpush.bf16.msra.mxu3 %v1272_v43  ;;  %585 = vmatmul.bf16.vlgmr.msra.gmra.mxu0 %v1762_v48  ;;  %v1435_v20 = vld [vmem:[#allocation2 + $0x2c] sm:$0xf0]  ;;  %v1188_v21 = vor.u32 %v1463_v11, %v1185_v13  ;;  %v1445_v23 = vld [vmem:[#allocation4 + $0x44] sm:$0xf]  ;;  %v1113_v24 = vld [vmem:[#allocation4 + $0x48] sm:$0xf0]  ;;  %v1308_v28 = vor.u32 %v1493_v16, %v1305_v17 }
  0x3f   :  { %604 = vmatmul.bf16.vlgmr.msra.gmra.mxu1 %v1764_v53  ;;  %653 = vmatpush.bf16.msrb.mxu0 %v1140_v58  ;;  %v1461_v25 = vld [vmem:[#allocation4 + $0xc4] sm:$0xf]  ;;  %v1065_v27 = vld [vmem:[#allocation2 + $0x30] sm:$0xf0]  ;;  %v1177_v29 = vld [vmem:[#allocation4 + $0xc8] sm:$0xf0]  ;;  %v1116_v38 = vor.u32 %v1445_v23, %v1113_v24 }
  0x40   :  { %623 = vmatmul.bf16.vlgmr.msra.gmra.mxu2 %v1766_v54  ;;  %672 = vmatpush.bf16.msrb.mxu1 %v1204_v59  ;;  %v1433_v26 = vld [vmem:[#allocation2 + $0x24] sm:$0xf]  ;;  %v1475_v30 = vld [vmem:[#allocation4 + $0x134] sm:$0xf]  ;;  %v1233_v31 = vld [vmem:[#allocation4 + $0x138] sm:$0xf0]  ;;  %v1180_v39 = vor.u32 %v1461_v25, %v1177_v29 }
  0x41   :  { %691 = vmatpush.bf16.msrb.mxu2 %v1268_v44  ;;  %642 = vmatmul.bf16.vlgmr.msra.gmra.mxu3 %v1768_v57  ;;  %v1071_v32 = vld [vmem:[#allocation2 + $0x28] sm:$0xf]  ;;  %v1491_v33 = vld [vmem:[#allocation4 + $0x1b4] sm:$0xf]  ;;  %v1297_v34 = vld [vmem:[#allocation4 + $0x1b8] sm:$0xf0]  ;;  %v1236_v40 = vor.u32 %v1475_v30, %v1233_v31  ;;  %v1774_v44 = vor.u32 %v1435_v20, %v1063_v19  ;;  %v1776_v50 = vor.u32 %v1433_v26, %v1065_v27 }
  0x42   :  { %710 = vmatpush.bf16.msrb.mxu3 %v1332_v49  ;;  %v1436_v35 = vld [vmem:[#allocation2 + $0x34] sm:$0xf0]  ;;  %v1434_v36 = vld [vmem:[#allocation2 + $0x2c] sm:$0xf]  ;;  %v1073_v37 = vld [vmem:[#allocation2 + $0x38] sm:$0xf0]  ;;  %v1300_v45 = vor.u32 %v1491_v33, %v1297_v34 }
  0x43   :  { %654 = vmatpush.bf16.msrb.mxu0 %v1132_v6  ;;  %v1443_v41 = vld [vmem:[#allocation4 + $0x34] sm:$0xf]  ;;  %v1105_v42 = vld [vmem:[#allocation4 + $0x38] sm:$0xf0]  ;;  %v1473_v47 = vld [vmem:[#allocation4 + $0x124] sm:$0xf]  ;;  %v1778_v51 = vor.u32 %v1436_v35, %v1071_v32  ;;  %v1780_v56 = vor.u32 %v1434_v36, %v1073_v37 }
  0x44   :  { %673 = vmatpush.bf16.msrb.mxu1 %v1196_v7  ;;  %v1459_v43 = vld [vmem:[#allocation4 + $0xb4] sm:$0xf]  ;;  %v1169_v46 = vld [vmem:[#allocation4 + $0xb8] sm:$0xf0]  ;;  %v1225_v49 = vld [vmem:[#allocation4 + $0x128] sm:$0xf0]  ;;  %v1108_v58 = vor.u32 %v1443_v41, %v1105_v42 }
  0x45   :  { %692 = vmatpush.bf16.msrb.mxu2 %v1260_v60  ;;  %v1489_v52 = vld [vmem:[#allocation4 + $0x1a4] sm:$0xf]  ;;  %v1289_v55 = vld [vmem:[#allocation4 + $0x1a8] sm:$0xf0]  ;;  %v1172_v59 = vor.u32 %v1459_v43, %v1169_v46  ;;  %v1228_v60 = vor.u32 %v1473_v47, %v1225_v49  ;;  %v1471_v2 = vld [vmem:[#allocation4 + $0x114] sm:$0xf] }
  0x46   :  { %711 = vmatpush.bf16.msrb.mxu3 %v1324_v0  ;;  %v1441_v61 = vld [vmem:[#allocation4 + $0x24] sm:$0xf]  ;;  %v1097_v62 = vld [vmem:[#allocation4 + $0x28] sm:$0xf0]  ;;  %v1292_v0 = vor.u32 %v1489_v52, %v1289_v55  ;;  %v1217_v3 = vld [vmem:[#allocation4 + $0x118] sm:$0xf0] }
  0x47   :  { %655 = vmatpush.bf16.msrb.mxu0 %v1124_v18  ;;  %v1457_v63 = vld [vmem:[#allocation4 + $0xa4] sm:$0xf]  ;;  %v1161_v1 = vld [vmem:[#allocation4 + $0xa8] sm:$0xf0]  ;;  %v1487_v4 = vld [vmem:[#allocation4 + $0x194] sm:$0xf]  ;;  %v1100_v6 = vor.u32 %v1441_v61, %v1097_v62 }
  0x48   :  { %674 = vmatpush.bf16.msrb.mxu1 %v1188_v21  ;;  %v1281_v5 = vld [vmem:[#allocation4 + $0x198] sm:$0xf0]  ;;  %v1164_v7 = vor.u32 %v1457_v63, %v1161_v1  ;;  %v1439_v9 = vld [vmem:[#allocation4 + $0x14] sm:$0xf]  ;;  %v1469_v14 = vld [vmem:[#allocation4 + $0x104] sm:$0xf] }
  0x49   :  { %693 = vmatpush.bf16.msrb.mxu2 %v1252_v8  ;;  %v1220_v8 = vor.u32 %v1471_v2, %v1217_v3  ;;  %v1089_v10 = vld [vmem:[#allocation4 + $0x18] sm:$0xf0]  ;;  %v1455_v11 = vld [vmem:[#allocation4 + $0x94] sm:$0xf]  ;;  %v1209_v15 = vld [vmem:[#allocation4 + $0x108] sm:$0xf0] }
  0x4a   :  { %712 = vmatpush.bf16.msrb.mxu3 %v1316_v12  ;;  %v1284_v12 = vor.u32 %v1487_v4, %v1281_v5  ;;  %v1153_v13 = vld [vmem:[#allocation4 + $0x98] sm:$0xf0]  ;;  %v1485_v16 = vld [vmem:[#allocation4 + $0x184] sm:$0xf]  ;;  %v1273_v17 = vld [vmem:[#allocation4 + $0x188] sm:$0xf0]  ;;  %v1092_v18 = vor.u32 %v1439_v9, %v1089_v10  ;;  %v1212_v20 = vor.u32 %v1469_v14, %v1209_v15 }
  0x4b   :  { %656 = vmatpush.bf16.msrb.mxu0 %v1116_v38  ;;  %v1156_v19 = vor.u32 %v1455_v11, %v1153_v13  ;;  %v1437_v21 = vld [vmem:[#allocation4 + $0x4] sm:$0xf]  ;;  %v1276_v23 = vor.u32 %v1485_v16, %v1273_v17  ;;  %v1145_v25 = vld [vmem:[#allocation4 + $0x88] sm:$0xf0]  ;;  %v1507_v29 = vld [vmem:[#allocation6 + $0x30] sm:$0xff]  ;;  %vm1032_vm0 = vcmask 7168  }
  0x4c   :  { %675 = vmatpush.bf16.msrb.mxu1 %v1180_v39  ;;  %v1453_v24 = vld [vmem:[#allocation4 + $0x84] sm:$0xf]  ;;  %v1506_v30 = vld [vmem:[#allocation6 + $0x28] sm:$0xff]  ;;  %v127_v37 = vld [vmem:[#allocation10 + $0x10] sm:$0xff] }
  0x4d   :  { %694 = vmatpush.bf16.msrb.mxu2 %v1244_v22  ;;  %v1081_v22 = vld [vmem:[#allocation4 + $0x8] sm:$0xf0]  ;;  %v1148_v27 = vor.u32 %v1453_v24, %v1145_v25  ;;  %v1501_v31 = vld [vmem:[#allocation6] sm:$0xff]  ;;  %v131_v62 = vld [vmem:[#allocation10 + $0x30] sm:$0xff] }
  0x4e   :  { %713 = vmatpush.bf16.msrb.mxu3 %v1308_v28  ;;  %590 = vmatmul.bf16.gmra.mxu0 %v1774_v44  ;;  %v1084_v26 = vor.u32 %v1437_v21, %v1081_v22  ;;  %v1508_v28 = vld [vmem:[#allocation6 + $0x38] sm:$0xff]  ;;  %v125_v33 = vld [vmem:[#allocation10] sm:$0xff]  ;;  %v1515_v5 = vld [vmem:[#allocation7 + $0x30] sm:$0xff] }
  0x4f   :  { %609 = vmatmul.bf16.gmra.mxu1 %v1776_v50  ;;  %657 = vmatpush.bf16.msrb.mxu0 %v1108_v58  ;;  %v1516_v3 = vld [vmem:[#allocation7 + $0x38] sm:$0xff]  ;;  %v1514_v13 = vld [vmem:[#allocation7 + $0x28] sm:$0xff]  ;;  %v1511_v21 = vld [vmem:[#allocation7 + $0x10] sm:$0xff] }
  0x50   :  { %628 = vmatmul.bf16.gmra.mxu2 %v1778_v51  ;;  %676 = vmatpush.bf16.msrb.mxu1 %v1172_v59  ;;  %v1510_v22 = vld [vmem:[#allocation7 + $0x8] sm:$0xff]  ;;  %v1509_v24 = vld [vmem:[#allocation7] sm:$0xff] }
  0x51   :  { %695 = vmatpush.bf16.msrb.mxu2 %v1236_v40  ;;  %647 = vmatmul.bf16.gmra.mxu3 %v1780_v56 }
  0x52   :  { %714 = vmatpush.bf16.msrb.mxu3 %v1300_v45 }
  0x53   :  { %658 = vmatpush.bf16.msrb.mxu0 %v1100_v6 }
  0x54   :  { %677 = vmatpush.bf16.msrb.mxu1 %v1164_v7 }
  0x55   :  { %696 = vmatpush.bf16.msrb.mxu2 %v1228_v60 }
  0x56   :  { %715 = vmatpush.bf16.msrb.mxu3 %v1292_v0 }
  0x57   :  { %659 = vmatpush.bf16.msrb.mxu0 %v1092_v18  ;;  %v1513_v18 = vld [vmem:[#allocation7 + $0x20] sm:$0xff] }
  0x58   :  { %678 = vmatpush.bf16.msrb.mxu1 %v1156_v19  ;;  %v1512_v19 = vld [vmem:[#allocation7 + $0x18] sm:$0xff] }
  0x59   :  { %697 = vmatpush.bf16.msrb.mxu2 %v1220_v8 }
  0x5a   :  { %716 = vmatpush.bf16.msrb.mxu3 %v1284_v12 }
  0x5b   :  { %660 = vmatpush.bf16.msrb.mxu0 %v1084_v26 }
  0x5c   :  { %679 = vmatpush.bf16.msrb.mxu1 %v1148_v27 }
  0x5d   :  { %698 = vmatpush.bf16.msrb.mxu2 %v1212_v20 }
  0x5e   :  { %717 = vmatpush.bf16.msrb.mxu3 %v1276_v23  ;;  %661 = vmatmul.bf16.vlgmr.msrb.gmra.mxu0 %v1762_v48  ;;  %v1504_v48 = vld [vmem:[#allocation6 + $0x18] sm:$0xff] }
  0x5f   :  { %799 = vmatpush.bf16.msra.mxu0 %v1508_v28  ;;  %680 = vmatmul.bf16.vlgmr.msrb.gmra.mxu1 %v1764_v53  ;;  %v1503_v53 = vld [vmem:[#allocation6 + $0x10] sm:$0xff] }
  0x60   :  { %699 = vmatmul.bf16.vlgmr.msrb.gmra.mxu2 %v1766_v54  ;;  %v1505_v54 = vld [vmem:[#allocation6 + $0x20] sm:$0xff]  ;;  %896 = vmatpush.bf16.msra.mxu1 %v1516_v3 }
  0x61   :  { %718 = vmatmul.bf16.vlgmr.msrb.gmra.mxu3 %v1768_v57  ;;  %v1502_v57 = vld [vmem:[#allocation6 + $0x8] sm:$0xff] }
  0x62   :  { %1525 = vmatpush.bf16.msra.mxu3 %v1508_v28  ;;  %v126_v28 = vld [vmem:[#allocation10 + $0x8] sm:$0xff] }
  0x63   :  { %800 = vmatpush.bf16.msra.mxu0 %v1507_v29 }
  0x64   :  { %897 = vmatpush.bf16.msra.mxu1 %v1515_v5 }
  0x66   :  { %1526 = vmatpush.bf16.msra.mxu3 %v1507_v29 }
  0x67   :  { %801 = vmatpush.bf16.msra.mxu0 %v1506_v30 }
  0x68   :  { %898 = vmatpush.bf16.msra.mxu1 %v1514_v13 }
  0x6a   :  { %1527 = vmatpush.bf16.msra.mxu3 %v1506_v30 }
  0x6b   :  { %802 = vmatpush.bf16.msra.mxu0 %v1505_v54 }
  0x6c   :  { %899 = vmatpush.bf16.msra.mxu1 %v1513_v18 }
  0x6e   :  { %666 = vmatmul.bf16.gmra.mxu0 %v1774_v44  ;;  %1528 = vmatpush.bf16.msra.mxu3 %v1505_v54  ;;  %v128_v54 = vld [vmem:[#allocation10 + $0x18] sm:$0xff] }
  0x6f   :  { %685 = vmatmul.bf16.gmra.mxu1 %v1776_v50  ;;  %803 = vmatpush.bf16.msra.mxu0 %v1504_v48 }
  0x70   :  { %704 = vmatmul.bf16.gmra.mxu2 %v1778_v51  ;;  %v129_v51 = vld [vmem:[#allocation10 + $0x20] sm:$0xff]  ;;  %900 = vmatpush.bf16.msra.mxu1 %v1512_v19 }
  0x71   :  { %723 = vmatmul.bf16.gmra.mxu3 %v1780_v56 }
  0x72   :  { %1529 = vmatpush.bf16.msra.mxu3 %v1504_v48 }
  0x73   :  { %804 = vmatpush.bf16.msra.mxu0 %v1503_v53 }
  0x74   :  { %901 = vmatpush.bf16.msra.mxu1 %v1511_v21 }
  0x76   :  { %1530 = vmatpush.bf16.msra.mxu3 %v1503_v53 }
  0x77   :  { %805 = vmatpush.bf16.msra.mxu0 %v1502_v57 }
  0x78   :  { %902 = vmatpush.bf16.msra.mxu1 %v1510_v22 }
  0x7a   :  { %1531 = vmatpush.bf16.msra.mxu3 %v1502_v57 }
  0x7b   :  { %806 = vmatpush.bf16.msra.mxu0 %v1501_v31 }
  0x7c   :  { %903 = vmatpush.bf16.msra.mxu1 %v1509_v24  ;;  %v1520_v24 = vld [vmem:[#allocation9 + $0x18] sm:$0xff] }
  0x7e   :  { %1532 = vmatpush.bf16.msra.mxu3 %v1501_v31  ;;  %v133_v31 = vld [vmem:[#allocation10 + $0x40] sm:$0xff] }
  0xbb   :  { %v586_v32 = vpop.f32.mrf.mxu0 }
  0xbc   :  { %v605_v34 = vpop.f32.mrf.mxu1  ;;  %v587_v35 = vadd.f32 %v586_v32, %v125_v33 }
  0xbe   :  { %v606_v38 = vadd.f32 %v605_v34, %v587_v35 }
  0xc3   :  { %v624_v36 = vpop.f32.mrf.mxu2  ;;  %v588_v40 = vpop.f32.mrf.mxu0 }
  0xc4   :  { %v643_v39 = vpop.f32.mrf.mxu3  ;;  %v607_v41 = vpop.f32.mrf.mxu1  ;;  %v589_v42 = vadd.f32 %v588_v40, %v127_v37  ;;  %v625_v43 = vadd.f32 %v624_v36, %v606_v38 }
  0xc6   :  { %v608_v44 = vadd.f32 %v607_v41, %v589_v42  ;;  %v644_v46 = vadd.f32 %v643_v39, %v625_v43  ;;  %v134_v39 = vld [vmem:[#allocation10 + $0x50] sm:$0xff] }
  0xc8   :  { %v729_v56 = vmax.f32 %v644_v46, 0.0 }
  0xcb   :  { %v626_v45 = vpop.f32.mrf.mxu2  ;;  %v591_v50 = vpop.f32.mrf.mxu0 }
  0xcc   :  { %v627_v47 = vadd.f32 %v626_v45, %v608_v44  ;;  %v645_v49 = vpop.f32.mrf.mxu3  ;;  %v610_v55 = vpop.f32.mrf.mxu1  ;;  %v592_v59 = vadd.f32 %v591_v50, %v129_v51  ;;  %v1524_v45 = vld [vmem:[#allocation9 + $0x38] sm:$0xff]  ;;  %v1523_v50 = vld [vmem:[#allocation9 + $0x30] sm:$0xff] }
  0xcd   :  { %985 = vmatpush.bf16.msra.mxu2 %v1524_v45 }
  0xce   :  { %v646_v52 = vadd.f32 %v645_v49, %v627_v47  ;;  %v611_v63 = vadd.f32 %v610_v55, %v592_v59  ;;  %v1522_v59 = vld [vmem:[#allocation9 + $0x28] sm:$0xff] }
  0xd0   :  { %v730_v58 = vmax.f32 %v646_v52, 0.0 }
  0xd1   :  { %986 = vmatpush.bf16.msra.mxu2 %v1523_v50  ;;  %v145_v50 = vld [vmem:[#allocation10 + $0x100] sm:$0xff] }
  0xd2   :  { %v733_v60 = vpack.c.bf16 %v730_v58, %v729_v56 }
  0xd3   :  { %v629_v61 = vpop.f32.mrf.mxu2  ;;  %v593_v1 = vpop.f32.mrf.mxu0 }
  0xd4   :  { %v648_v0 = vpop.f32.mrf.mxu3  ;;  %807 = vmatmul.bf16.vlgmr.msra.gmra.mxu0 %v733_v60  ;;  %v594_v2 = vadd.f32 %v593_v1, %v131_v62  ;;  %v630_v4 = vadd.f32 %v629_v61, %v611_v63  ;;  %v612_v6 = vpop.f32.mrf.mxu1  ;;  %v130_v60 = vld [vmem:[#allocation10 + $0x28] sm:$0xff]  ;;  %v132_v63 = vld [vmem:[#allocation10 + $0x38] sm:$0xff]  ;;  %v1521_v1 = vld [vmem:[#allocation9 + $0x20] sm:$0xff] }
  0xd5   :  { %987 = vmatpush.bf16.msra.mxu2 %v1522_v59 }
  0xd6   :  { %v613_v7 = vadd.f32 %v612_v6, %v594_v2  ;;  %v649_v9 = vadd.f32 %v648_v0, %v630_v4  ;;  %v135_v4 = vld [vmem:[#allocation10 + $0x60] sm:$0xff] }
  0xd8   :  { %v731_v14 = vmax.f32 %v649_v9, 0.0 }
  0xd9   :  { %988 = vmatpush.bf16.msra.mxu2 %v1521_v1 }
  0xdb   :  { %v631_v8 = vpop.f32.mrf.mxu2  ;;  %v662_v17 = vpop.f32.mrf.mxu0 }
  0xdc   :  { %v632_v10 = vadd.f32 %v631_v8, %v613_v7  ;;  %v650_v11 = vpop.f32.mrf.mxu3  ;;  %v681_v26 = vpop.f32.mrf.mxu1  ;;  %v663_v48 = vadd.f32 %v662_v17, %v126_v28 }
  0xdd   :  { %989 = vmatpush.bf16.msra.mxu2 %v1520_v24 }
  0xde   :  { %v651_v12 = vadd.f32 %v650_v11, %v632_v10  ;;  %v682_v33 = vadd.f32 %v681_v26, %v663_v48  ;;  %v136_v11 = vld [vmem:[#allocation10 + $0x70] sm:$0xff]  ;;  %v1518_v26 = vld [vmem:[#allocation9 + $0x8] sm:$0xff] }
  0xe0   :  { %v732_v15 = vmax.f32 %v651_v12, 0.0 }
  0xe2   :  { %v734_v16 = vpack.c.bf16 %v732_v15, %v731_v14 }
  0xe3   :  { %v664_v20 = vpop.f32.mrf.mxu0  ;;  %v700_v29 = vpop.f32.mrf.mxu2 }
  0xe4   :  { %812 = vmatmul.bf16.vlgmr.msra.gmra.mxu3 %v734_v16  ;;  %v719_v25 = vpop.f32.mrf.mxu3  ;;  %v665_v53 = vadd.f32 %v664_v20, %v128_v54  ;;  %v683_v57 = vpop.f32.mrf.mxu1  ;;  %v701_v38 = vadd.f32 %v700_v29, %v682_v33  ;;  %v137_v29 = vld [vmem:[#allocation10 + $0x80] sm:$0xff] }
  0xe6   :  { %v684_v34 = vadd.f32 %v683_v57, %v665_v53  ;;  %v720_v43 = vadd.f32 %v719_v25, %v701_v38  ;;  %v1519_v25 = vld [vmem:[#allocation9 + $0x10] sm:$0xff] }
  0xe7   :  { %990 = vmatpush.bf16.msra.mxu2 %v1519_v25 }
  0xeb   :  { %v667_v23 = vpop.f32.mrf.mxu0  ;;  %v702_v36 = vpop.f32.mrf.mxu2  ;;  %991 = vmatpush.bf16.msra.mxu2 %v1518_v26 }
  0xec   :  { %v721_v30 = vpop.f32.mrf.mxu3  ;;  %v703_v40 = vadd.f32 %v702_v36, %v684_v34  ;;  %v686_v51 = vpop.f32.mrf.mxu1  ;;  %v668_v0 = vadd.f32 %v667_v23, %v130_v60  ;;  %v139_v34 = vld [vmem:[#allocation10 + $0xa0] sm:$0xff] }
  0xee   :  { %v722_v46 = vadd.f32 %v721_v30, %v703_v40  ;;  %v687_v6 = vadd.f32 %v686_v51, %v668_v0  ;;  %v138_v30 = vld [vmem:[#allocation10 + $0x90] sm:$0xff] }
  0xf3   :  { %v669_v27 = vpop.f32.mrf.mxu0  ;;  %v705_v61 = vpop.f32.mrf.mxu2 }
  0xf4   :  { %v724_v37 = vpop.f32.mrf.mxu3  ;;  %v670_v2 = vadd.f32 %v669_v27, %v132_v63  ;;  %v688_v3 = vpop.f32.mrf.mxu1  ;;  %v706_v10 = vadd.f32 %v705_v61, %v687_v6  ;;  %v1517_v27 = vld [vmem:[#allocation9] sm:$0xff]  ;;  %v146_v63 = vld [vmem:[#allocation10 + $0x110] sm:$0xff] }
  0xf5   :  { %992 = vmatpush.bf16.msra.mxu2 %v1517_v27  ;;  %v147_v6 = vld [vmem:[#allocation10 + $0x120] sm:$0xff] }
  0xf6   :  { %v689_v7 = vadd.f32 %v688_v3, %v670_v2  ;;  %v725_v15 = vadd.f32 %v724_v37, %v706_v10  ;;  %v143_v2 = vld [vmem:[#allocation10 + $0xe0] sm:$0xff] }
  0xfb   :  { %v707_v9 = vpop.f32.mrf.mxu2 }
  0xfc   :  { %v726_v55 = vpop.f32.mrf.mxu3  ;;  %v708_v12 = vadd.f32 %v707_v9, %v689_v7 }
  0xfe   :  { %v727_v17 = vadd.f32 %v726_v55, %v708_v12 }
 0x151   :  { %v808_v32 = vpop.f32.mrf.mxu0 }
 0x152   :  { %v809_v35 = vadd.f32 %v808_v32, %v133_v31 }
 0x154   :  { %v818_v41 = vmax.f32 %v809_v35, 0.0  ;;  %v140_v35 = vld [vmem:[#allocation10 + $0xb0] sm:$0xff] }
 0x156   :  { %v1794_v47 = vadd.f32 %v818_v41, %v720_v43 }
 0x158   :  { %v826_v56 = vmax.f32 %v1794_v47, 0.0 }
 0x159   :  { %v810_v42 = vpop.f32.mrf.mxu0 }
 0x15a   :  { %v811_v44 = vadd.f32 %v810_v42, %v134_v39  ;;  %v141_v42 = vld [vmem:[#allocation10 + $0xc0] sm:$0xff] }
 0x15c   :  { %v819_v49 = vmax.f32 %v811_v44, 0.0 }
 0x15e   :  { %v1796_v52 = vadd.f32 %v819_v49, %v722_v46  ;;  %v142_v49 = vld [vmem:[#allocation10 + $0xd0] sm:$0xff] }
 0x160   :  { %v827_v58 = vmax.f32 %v1796_v52, 0.0  ;;  %v148_v52 = vld [vmem:[#allocation10 + $0x130] sm:$0xff] }
 0x162   :  { %v830_v62 = vpack.c.bf16 %v827_v58, %v826_v56 }
 0x164   :  { %904 = vmatmul.bf16.vlgmr.msra.gmra.mxu1 %v830_v62 }
 0x167   :  { %v813_v5 = vpop.f32.mrf.mxu3 }
 0x168   :  { %v814_v8 = vadd.f32 %v813_v5, %v135_v4  ;;  %v144_v5 = vld [vmem:[#allocation10 + $0xf0] sm:$0xff] }
 0x16a   :  { %v820_v13 = vmax.f32 %v814_v8, 0.0 }
 0x16c   :  { %v824_v18 = vadd.f32 %v820_v13, %v725_v15 }
 0x16e   :  { %v828_v21 = vmax.f32 %v824_v18, 0.0 }
 0x16f   :  { %v815_v14 = vpop.f32.mrf.mxu3 }
 0x170   :  { %v816_v16 = vadd.f32 %v815_v14, %v136_v11  ;;  %v149_v14 = vld [vmem:[#allocation10 + $0x140] sm:$0xff] }
 0x172   :  { %v821_v19 = vmax.f32 %v816_v16, 0.0 }
 0x174   :  { %v1804_v20 = vadd.f32 %v821_v19, %v727_v17  ;;  %v150_v17 = vld [vmem:[#allocation10 + $0x150] sm:$0xff] }
 0x176   :  { %v829_v22 = vmax.f32 %v1804_v20, 0.0  ;;  %v151_v20 = vld [vmem:[#allocation10 + $0x160] sm:$0xff] }
 0x178   :  { %v831_v23 = vpack.c.bf16 %v829_v22, %v828_v21 }
 0x17a   :  { %909 = vmatmul.bf16.gmra.mxu1 %v831_v23  ;;  %v152_v23 = vld [vmem:[#allocation10 + $0x170] sm:$0xff] }
 0x1e1   :  { %v905_v28 = vpop.f32.mrf.mxu1 }
 0x1e2   :  { %v906_v54 = vadd.f32 %v905_v28, %v137_v29 }
 0x1e4   :  { %v915_v57 = vmax.f32 %v906_v54, 0.0 }
 0x1e9   :  { %v907_v48 = vpop.f32.mrf.mxu1 }
 0x1ea   :  { %v908_v53 = vadd.f32 %v907_v48, %v138_v30 }
 0x1ec   :  { %v916_v31 = vmax.f32 %v908_v53, 0.0 }
 0x1ee   :  { %v919_v32 = vpack.c.bf16 %v916_v31, %v915_v57 }
 0x1f0   :  { %993 = vmatmul.bf16.vlgmr.msra.gmra.mxu2 %v919_v32 }
 0x1f7   :  { %v910_v33 = vpop.f32.mrf.mxu1 }
 0x1f8   :  { %v911_v36 = vadd.f32 %v910_v33, %v139_v34 }
 0x1fa   :  { %v917_v39 = vmax.f32 %v911_v36, 0.0 }
 0x1ff   :  { %v912_v37 = vpop.f32.mrf.mxu1 }
 0x200   :  { %v913_v38 = vadd.f32 %v912_v37, %v140_v35 }
 0x202   :  { %v918_v40 = vmax.f32 %v913_v38, 0.0 }
 0x204   :  { %v920_v41 = vpack.c.bf16 %v918_v40, %v917_v39 }
 0x206   :  { %998 = vmatmul.bf16.gmra.mxu2 %v920_v41 }
 0x273   :  { %v994_v43 = vpop.f32.mrf.mxu2 }
 0x274   :  { %v995_v44 = vadd.f32 %v994_v43, %v141_v42 }
 0x276   :  { %v1004_v45 = vmax.f32 %v995_v44, 0.0 }
 0x278   :  { %v1008_v46 = vadd.f32 %v1004_v45, %v826_v56 }
 0x27a   :  { %v1012_v51 = vmax.f32 %v1008_v46, 0.0 }
 0x27b   :  { %v996_v55 = vpop.f32.mrf.mxu2 }
 0x27c   :  { %v997_v59 = vadd.f32 %v996_v55, %v142_v49  ;;  %v1016_v60 = vmul.f32 %v1012_v51, %v145_v50 }
 0x27e   :  { %v1005_v61 = vmax.f32 %v997_v59, 0.0  ;;  %1020 = vadd.xlane.f32.xlu0 %v1016_v60 }
 0x280   :  { %v1009_v62 = vadd.f32 %v1005_v61, %v827_v58 }
 0x282   :  { %v1013_v0 = vmax.f32 %v1009_v62, 0.0 }
 0x284   :  { %v1017_v1 = vmul.f32 %v1013_v0, %v146_v63 }
 0x286   :  { %1022 = vadd.xlane.f32.xlu0 %v1017_v1 }
 0x289   :  { %v999_v3 = vpop.f32.mrf.mxu2 }
 0x28a   :  { %v1000_v4 = vadd.f32 %v999_v3, %v143_v2 }
 0x28c   :  { %v1006_v47 = vmax.f32 %v1000_v4, 0.0 }
 0x28e   :  { %v1010_v56 = vadd.f32 %v1006_v47, %v828_v21 }
 0x290   :  { %v1014_v7 = vmax.f32 %v1010_v56, 0.0 }
 0x291   :  { %v1001_v8 = vpop.f32.mrf.mxu2 }
 0x292   :  { %v1002_v9 = vadd.f32 %v1001_v8, %v144_v5  ;;  %v1018_v10 = vmul.f32 %v1014_v7, %v147_v6 }
 0x294   :  { %v1007_v11 = vmax.f32 %v1002_v9, 0.0  ;;  %1024 = vadd.xlane.f32.xlu1 %v1018_v10 }
 0x296   :  { %v1011_v12 = vadd.f32 %v1007_v11, %v829_v22 }
 0x298   :  { %v1015_v58 = vmax.f32 %v1011_v12, 0.0 }
 0x29a   :  { %v1019_v13 = vmul.f32 %v1015_v58, %v148_v52 }
 0x29c   :  { %1026 = vadd.xlane.f32.xlu1 %v1019_v13 }
 0x2f1   :  { %v1021_v15 = vpop.xlane.xlu0 %1020 }
 0x2f2   :  { %v1028_v16 = vadd.f32 %v1021_v15, %v149_v14 }
 0x2f4   :  { %1033 = vst.msk [vmem:[%s1829_s6] sm:$0xff] %vm1032_vm0, %v1028_v16 }
 0x2f9   :  { %v1023_v18 = vpop.xlane.xlu0 %1022 }
 0x2fa   :  { %v1029_v19 = vadd.f32 %v1023_v18, %v150_v17 }
 0x2fc   :  { %1034 = vst.msk [vmem:[%s1829_s6 + $0x8] sm:$0xff] %vm1032_vm0, %v1029_v19 }
 0x307   :  { %v1025_v21 = vpop.xlane.xlu1 %1024 }
 0x308   :  { %v1030_v22 = vadd.f32 %v1025_v21, %v151_v20 }
 0x30a   :  { %1035 = vst.msk [vmem:[%s1829_s6 + $0x10] sm:$0xff] %vm1032_vm0, %v1030_v22 }
 0x30f   :  { %v1027_v24 = vpop.xlane.xlu1 %1026 }
 0x310   :  { %v1031_v25 = vadd.f32 %v1027_v24, %v152_v23 }
 0x312   :  { %1036 = vst.msk [vmem:[%s1829_s6 + $0x18] sm:$0xff] %vm1032_vm0, %v1031_v25 }
 0x313   :  { %1041 = vsyncpa [#allocation3], 1 }
 0x314   :  { %1042 = vsyncpa [#allocation5], 1 }
 0x315   :  { %1043 = vsyncpa [#allocation8], 1 }
 0x316   :  { %1044 = vsyncpa [#allocation11], 1 }

</bundles_post_ra>
